<compile_context>
chip_gen: v7x
topology: tpu7x:2x2x1
jax: 0.10.0
libtpu: 0.0.40
codegen_flags: <defaults>
</compile_context>

<pallas_src>
import numpy as np
import jax
import jax.numpy as jnp
from jax.experimental import pallas as pl
from jax.experimental.pallas import tpu as pltpu

try:
    from scipy.optimize import linear_sum_assignment as _lsa
except Exception:  # pragma: no cover - scipy not installed
    _lsa = None


# ----------------------------------------------------------------------------
# Kernels: batched pairwise Euclidean distance matrix (torch.cdist, p=2)
# Both kernels take pred as (tb, N, D) and target pre-transposed as (tb, D, N).
# ----------------------------------------------------------------------------
def _cdist_direct_kernel(pred_ref, tgt_t_ref, dist_ref):
    """Small-D path: pure VPU, unrolled over the coordinate dimension."""
    p = pred_ref[...].astype(jnp.float32)      # (tb, N, D)
    tT = tgt_t_ref[...].astype(jnp.float32)    # (tb, D, N)
    D = p.shape[-1]
    d2 = jnp.zeros(dist_ref.shape, jnp.float32)
    for d in range(D):                          # static unroll, D is tiny
        # (tb, N, 1) - (tb, 1, N) -> (tb, N, N); broadcast-subtract on the VPU
        diff = p[:, :, d:d + 1] - tT[:, d:d + 1, :]
        d2 = d2 + diff * diff
    dist_ref[...] = jnp.sqrt(d2)               # EUP


def _cdist_matmul_kernel(pred_ref, tgt_t_ref, dist_ref):
    """Large-N / large-D path: MXU decomposition (target already (tb, D, N),
    so the contraction is a straight [N,D]x[D,N] dot, no in-kernel transpose)."""
    p = pred_ref[...].astype(jnp.float32)      # (tb, N, D)
    tT = tgt_t_ref[...].astype(jnp.float32)    # (tb, D, N)
    cross = jnp.einsum("bnd,bdm->bnm", p, tT,
                       preferred_element_type=jnp.float32)     # (tb, N, N) MXU
    p_sq = jnp.sum(p * p, axis=-1, keepdims=True)              # (tb, N, 1)
    t_sq = jnp.sum(tT * tT, axis=1)[:, None, :]                # (tb, 1, N)
    d2 = jnp.maximum(p_sq + t_sq - 2.0 * cross, 0.0)           # clamp cancellation
    dist_ref[...] = jnp.sqrt(d2)


# ----------------------------------------------------------------------------
# Wrapper: tiling / grid / VMEM budgeting
# ----------------------------------------------------------------------------
def _vmem_capacity_bytes():
    try:
        cap = getattr(pltpu.get_tpu_info(), "vmem_capacity_bytes", None)
        if cap:
            return int(cap)
    except Exception:
        pass
    return 64 << 20  # conservative fallback (v7x per-TC physical VMEM)


def pairwise_dist(pred, target, *, tb=None):
    """Batched torch.cdist(pred[b], target[b], p=2) for all b, on TPU."""
    B, N, D = pred.shape
    assert target.shape == (B, N, D)

    # Pre-transpose target once on the wrapper side: (B, D, N).
    target_t = jnp.swapaxes(target, 1, 2)

    vmem_cap = _vmem_capacity_bytes()
    if tb is None:
        # Double-buffer-aware resident footprint per batch element (f32 tiles):
        #   2 copies x (pred tile + target tile + output tile)
        bytes_per_b = 2 * (2 * N * D + N * N) * 4
        budget = vmem_cap // 4        # headroom for compiler scratch etc.
        tb = max(1, min(B, budget // max(bytes_per_b, 1)))
        # Megacore: if a single step holds non-trivial work, keep >= 2
        # "parallel" grid steps so both TensorCores (v7x) get a share.
        if B >= 2 and tb * N * N * 4 > (1 << 20):
            tb = min(tb, pl.cdiv(B, 2))

    # Pad the batch up to a multiple of tb (no exact-divisor search); padded
    # rows are all-zero and sliced off after the call.
    Bp = pl.cdiv(B, tb) * tb
    if Bp != B:
        pad = Bp - B
        pred = jnp.concatenate(
            [pred, jnp.zeros((pad, N, D), pred.dtype)], axis=0)
        target_t = jnp.concatenate(
            [target_t, jnp.zeros((pad, D, N), target_t.dtype)], axis=0)

    use_matmul = (D >= 32) and (N >= 128)
    kernel = _cdist_matmul_kernel if use_matmul else _cdist_direct_kernel

    dist = pl.pallas_call(
        kernel,
        out_shape=jax.ShapeDtypeStruct((Bp, N, N), jnp.float32),
        grid=(Bp // tb,),
        in_specs=[
            pl.BlockSpec((tb, N, D), lambda g: (g, 0, 0)),
            pl.BlockSpec((tb, D, N), lambda g: (g, 0, 0)),
        ],
        out_specs=pl.BlockSpec((tb, N, N), lambda g: (g, 0, 0)),
        compiler_params=pltpu.CompilerParams(
            dimension_semantics=("parallel",),
            vmem_limit_bytes=int(vmem_cap // 2),
        ),
    )(pred, target_t)

    return dist[:B] if Bp != B else dist


# ----------------------------------------------------------------------------
# Host-side Hungarian algorithm.
# TODO(synk): linear_sum_assignment is a sequential, data-dependent algorithm
#             with no clean Pallas equivalent; it runs on host (scipy when
#             available, pure-Python O(N^3) fallback otherwise).
# ----------------------------------------------------------------------------
def _hungarian(cost):
    cost = np.asarray(cost, dtype=np.float64)
    n = cost.shape[0]
    INF = float("inf")
    u = [0.0] * (n + 1)
    v = [0.0] * (n + 1)
    p = [0] * (n + 1)
    way = [0] * (n + 1)
    for i in range(1, n + 1):
        p[0] = i
        j0 = 0
        minv = [INF] * (n + 1)
        used = [False] * (n + 1)
        while True:
            used[j0] = True
            i0 = p[j0]
            delta = INF
            j1 = -1
            for j in range(1, n + 1):
                if not used[j]:
                    cur = cost[i0 - 1][j - 1] - u[i0] - v[j]
                    if cur < minv[j]:
                        minv[j] = cur
                        way[j] = j0
                    if minv[j] < delta:
                        delta = minv[j]
                        j1 = j
            for j in range(n + 1):
                if used[j]:
                    u[p[j]] += delta
                    v[j] -= delta
                else:
                    minv[j] -= delta
            j0 = j1
            if p[j0] == 0:
                break
        while True:
            j1 = way[j0]
            p[j0] = p[j1]
            j0 = j1
            if j0 == 0:
                break
    row_ind = np.array([p[j] - 1 for j in range(1, n + 1)], dtype=np.int64)
    col_ind = np.arange(n, dtype=np.int64)
    return row_ind, col_ind


def _assign(cost_np):
    if _lsa is not None:
        return _lsa(cost_np)
    return _hungarian(cost_np)


# ----------------------------------------------------------------------------
# Forward pass of HungarianSumOfDistancesLoss
# ----------------------------------------------------------------------------
def hungarian_sum_of_distances_loss(pred, target):
    B, N, _ = pred.shape
    # 1) pairwise distance matrices on TPU (single fused pallas_call)
    dist = pairwise_dist(pred, target)                         # (B, N, N) f32
    # 2) Hungarian assignment on host (single device_get), then a vectorized
    #    numpy gather/sum of the matched distances — no second kernel launch
    #    or HBM round trip.
    dist_np = np.asarray(jax.device_get(dist))
    rows = np.empty((B, N), dtype=np.int64)
    cols = np.empty((B, N), dtype=np.int64)
    for b in range(B):
        rows[b], cols[b] = _assign(dist_np[b])
    matched = dist_np[np.arange(B)[:, None], rows, cols]        # (B, N)
    total = matched.sum()
    # 3) average over batch
    return jnp.asarray(total / B, dtype=jnp.float32)


if __name__ == "__main__":
    key = jax.random.PRNGKey(0)
    B, N, D = 2, 8, 3
    k1, k2 = jax.random.split(key)
    pred = jax.random.normal(k1, (B, N, D), dtype=jnp.float32)
    target = jax.random.normal(k2, (B, N, D), dtype=jnp.float32)

    # Kernel correctness sanity check against a numpy reference (direct form).
    dist = np.asarray(jax.device_get(pairwise_dist(pred, target)))
    p_np = np.asarray(pred)[:, :, None, :]
    t_np = np.asarray(target)[:, None, :, :]
    ref = np.sqrt(((p_np - t_np) ** 2).sum(-1))
    assert np.allclose(dist, ref, atol=1e-5), "pairwise_dist mismatch"

    loss = hungarian_sum_of_distances_loss(pred, target)
    jax.block_until_ready(loss)
    print("KERNEL_OK")
</pallas_src>

<mosaic_0001>
module attributes {stable_mosaic.version = 11 : i64} {
  func.func @_cdist_direct_kernel(%arg0: i32, %arg1: memref<2x8x3xf32, #tpu.memory_space<vmem>>, %arg2: memref<2x3x8xf32, #tpu.memory_space<vmem>>, %arg3: memref<2x8x8xf32, #tpu.memory_space<vmem>>) attributes {dimension_semantics = [#tpu.dimension_semantics<parallel>], iteration_bounds = array<i64: 1>, scalar_prefetch = 0 : i64, scratch_operands = 0 : i64, tpu.core_type = #tpu.core_type<tc>, window_params = [{transform_indices = @transform_0, window_bounds = array<i64: 2, 8, 3>}, {transform_indices = @transform_1, window_bounds = array<i64: 2, 3, 8>}, {transform_indices = @transform_2, window_bounds = array<i64: 2, 8, 8>}]} {
    %c0 = arith.constant 0 : index
    %c0_0 = arith.constant 0 : index
    %c0_1 = arith.constant 0 : index
    %0 = vector.load %arg1[%c0, %c0_0, %c0_1] : memref<2x8x3xf32, #tpu.memory_space<vmem>>, vector<2x8x3xf32>
    %c0_2 = arith.constant 0 : index
    %c0_3 = arith.constant 0 : index
    %c0_4 = arith.constant 0 : index
    %1 = vector.load %arg2[%c0_2, %c0_3, %c0_4] : memref<2x3x8xf32, #tpu.memory_space<vmem>>, vector<2x3x8xf32>
    %cst = arith.constant 0.000000e+00 : f32
    %2 = vector.broadcast %cst : f32 to vector<2x8x8xf32>
    %3 = vector.extract_strided_slice %0 {offsets = [0, 0, 0], sizes = [2, 8, 1], strides = [1, 1, 1]} : vector<2x8x3xf32> to vector<2x8x1xf32>
    %4 = vector.extract_strided_slice %1 {offsets = [0, 0, 0], sizes = [2, 1, 8], strides = [1, 1, 1]} : vector<2x3x8xf32> to vector<2x1x8xf32>
    %5 = vector.broadcast %3 : vector<2x8x1xf32> to vector<2x8x8xf32>
    %6 = vector.broadcast %4 : vector<2x1x8xf32> to vector<2x8x8xf32>
    %7 = arith.subf %5, %6 : vector<2x8x8xf32>
    %8 = arith.mulf %7, %7 : vector<2x8x8xf32>
    %9 = arith.addf %2, %8 : vector<2x8x8xf32>
    %10 = vector.extract_strided_slice %0 {offsets = [0, 0, 1], sizes = [2, 8, 1], strides = [1, 1, 1]} : vector<2x8x3xf32> to vector<2x8x1xf32>
    %11 = vector.extract_strided_slice %1 {offsets = [0, 1, 0], sizes = [2, 1, 8], strides = [1, 1, 1]} : vector<2x3x8xf32> to vector<2x1x8xf32>
    %12 = vector.broadcast %10 : vector<2x8x1xf32> to vector<2x8x8xf32>
    %13 = vector.broadcast %11 : vector<2x1x8xf32> to vector<2x8x8xf32>
    %14 = arith.subf %12, %13 : vector<2x8x8xf32>
    %15 = arith.mulf %14, %14 : vector<2x8x8xf32>
    %16 = arith.addf %9, %15 : vector<2x8x8xf32>
    %17 = vector.extract_strided_slice %0 {offsets = [0, 0, 2], sizes = [2, 8, 1], strides = [1, 1, 1]} : vector<2x8x3xf32> to vector<2x8x1xf32>
    %18 = vector.extract_strided_slice %1 {offsets = [0, 2, 0], sizes = [2, 1, 8], strides = [1, 1, 1]} : vector<2x3x8xf32> to vector<2x1x8xf32>
    %19 = vector.broadcast %17 : vector<2x8x1xf32> to vector<2x8x8xf32>
    %20 = vector.broadcast %18 : vector<2x1x8xf32> to vector<2x8x8xf32>
    %21 = arith.subf %19, %20 : vector<2x8x8xf32>
    %22 = arith.mulf %21, %21 : vector<2x8x8xf32>
    %23 = arith.addf %16, %22 : vector<2x8x8xf32>
    %24 = math.sqrt %23 : vector<2x8x8xf32>
    %c0_5 = arith.constant 0 : index
    %c0_6 = arith.constant 0 : index
    %c0_7 = arith.constant 0 : index
    %25 = vector.load %arg3[%c0_5, %c0_6, %c0_7] : memref<2x8x8xf32, #tpu.memory_space<vmem>>, vector<2x8x8xf32>
    tpu.vector_store %arg3[%c0_5, %c0_6, %c0_7], %24 {strides = array<i32>} : memref<2x8x8xf32, #tpu.memory_space<vmem>>, vector<2x8x8xf32>,
    return
  }
  func.func @transform_0(%arg0: i32) -> (i32, i32, i32) {
    %c0_i32 = arith.constant 0 : i32
    %c0_i32_0 = arith.constant 0 : i32
    %c0_i32_1 = arith.constant 0 : i32
    return %arg0, %c0_i32, %c0_i32_0 : i32, i32, i32
  }
  func.func @transform_1(%arg0: i32) -> (i32, i32, i32) {
    %c0_i32 = arith.constant 0 : i32
    %c0_i32_0 = arith.constant 0 : i32
    %c0_i32_1 = arith.constant 0 : i32
    return %arg0, %c0_i32, %c0_i32_0 : i32, i32, i32
  }
  func.func @transform_2(%arg0: i32) -> (i32, i32, i32) {
    %c0_i32 = arith.constant 0 : i32
    %c0_i32_0 = arith.constant 0 : i32
    %c0_i32_1 = arith.constant 0 : i32
    return %arg0, %c0_i32, %c0_i32_0 : i32, i32, i32
  }
}

</mosaic_0001>

<bundles_post_ra>
// kernel: tpu_custom_call.1
= control target key start
LH: loop header
LB: loop body
LE: loop exit
PB: predicated region body
PF: predicated region fallthrough
CT: control target
= control target key end

     0   :  { %v155_v1 = vmov 1   ;;  %v156_v2 = vmov 0   ;;  %s200_s0 = inlined_call_operand.vmem [shape: f32[2,8,3], index: 0, kind: input, shape index: {}]   ;;  %s201_s1 = inlined_call_operand.vmem [shape: f32[2,3,8], index: 1, kind: input, shape index: {}]   ;;  %s202_s2 = inlined_call_operand.hbm [shape: f32[2,8,8], index: 2, kind: output, shape index: {}]  }
   0x1   :  { %v12_v0 = vld [vmem:[%s200_s0] sm:$0xff]  ;;  %124 = vset.pattern.permute.xlu1 %v155_v1  ;;  %123 = vset.pattern.permute.xlu0 %v156_v2 }
   0x2   :  { %7 = vsyncpa [#allocation3], 0  ;;  %41 = vperm.xlu1 %124, %v12_v0   ;;  %18 = vperm.xlu0 %123, %v12_v0   ;;  %v13_v3 = vld [vmem:[%s200_s0 + $0x8] sm:$0xff]  ;;  %v157_v4 = vmov 2   ;;  %v26_v5 = vlaneseq  ;;  %v14_v9 = vld [vmem:[%s201_s1] sm:$0x7] }
   0x3   :  { %v15_v10 = vld [vmem:[%s201_s1 + $0x4] sm:$0x7]  ;;  %s158_s0 = smov [#allocation2]   ;;  %vm98_vm1 = vcmask 64512  }
   0x4   :  { %v27_v6 = vshrl.u32 %v26_v5, 7  ;;  %s106_s1 = sshll.u32 %s158_s0, 4  ;;  %s107_s1 = int_to_ptr.vmem [resolvable:$true] %s106_s1 }
   0x5   :  { %s131_s17 = scalar_lea.vmem %s107_s1, 256  ;;  %p136_p1 = scmp.lt.s32.totalorder %s107_s1, %s107_s1 }
   0x6   :  { %45 = vperm.xlu1 %124, %v13_v3   ;;  %23 = vperm.xlu0 %123, %v13_v3   ;;  %v50_v7 = vsub.s32 1, %v27_v6  ;;  %v28_v8 = vsub.s32 0, %v27_v6  ;;  %v72_v17 = vsub.s32 2, %v27_v6  ;;  %p132_p0 = scmp.ne.s32.totalorder %s107_s1, %s131_s17  ;;  %p137_p2 = scmp.lt.s32.totalorder %s131_s17, %s131_s17 }
   0x8   :  { %v51_v11 = vrot.slane %v14_v9, %v50_v7  ;;  %v29_v13 = vrot.slane %v14_v9, %v28_v8  ;;  %v55_v15 = vrot.slane %v15_v10, %v50_v7  ;;  %v33_v16 = vrot.slane %v15_v10, %v28_v8  ;;  %p138_p3 = por %p137_p2, %p136_p1 }
   0x9   :  { %v77_v24 = vrot.slane %v15_v10, %v72_v17  ;;  %v73_v25 = vrot.slane %v14_v9, %v72_v17 }
   0xa   :  { %126 = vset.pattern.permute.xlu1 %v157_v4  ;;  %125 = vset.pattern.permute.xlu0 %v157_v4  ;;  %p139_p4 = pnand %p138_p3, %p132_p0 }
   0xb   :  { %67 = vperm.xlu1 %126, %v13_v3   ;;  %63 = vperm.xlu0 %125, %v12_v0  }
  0x81   :  { %v42_v12 = vpop.permute.xlu1 %41  ;;  %v19_v14 = vpop.permute.xlu0 %18 }
  0x82   :  { %v56_v18 = vsub.f32 %v42_v12, %v51_v11  ;;  %v34_v19 = vsub.f32 %v19_v14, %v29_v13 }
  0x84   :  { %v58_v26 = vmul.f32 %v56_v18, %v56_v18  ;;  %v36_v27 = vmul.f32 %v34_v19, %v34_v19 }
  0x85   :  { %v46_v20 = vpop.permute.xlu1 %45  ;;  %v24_v21 = vpop.permute.xlu0 %23 }
  0x86   :  { %v57_v22 = vsub.f32 %v46_v20, %v55_v15  ;;  %v35_v23 = vsub.f32 %v24_v21, %v33_v16  ;;  %v60_v34 = vadd.f32 %v58_v26, %v36_v27 }
  0x88   :  { %v59_v28 = vmul.f32 %v57_v22, %v57_v22  ;;  %v37_v29 = vmul.f32 %v35_v23, %v35_v23 }
  0x8a   :  { %v68_v30 = vpop.permute.xlu1 %67  ;;  %v64_v31 = vpop.permute.xlu0 %63  ;;  %v61_v35 = vadd.f32 %v59_v28, %v37_v29 }
  0x8b   :  { %v79_v32 = vsub.f32 %v68_v30, %v77_v24  ;;  %v78_v33 = vsub.f32 %v64_v31, %v73_v25 }
  0x8d   :  { %v81_v36 = vmul.f32 %v79_v32, %v79_v32  ;;  %v80_v37 = vmul.f32 %v78_v33, %v78_v33 }
  0x8f   :  { %v83_v38 = vadd.f32 %v81_v36, %v61_v35  ;;  %v82_v39 = vadd.f32 %v80_v37, %v60_v34 }
  0x91   :  { %127 = vrsqrt.f32 %v83_v38  ;;  %vm93_vm0 = vcmp.eq.f32.partialorder %v83_v38, inf  ;;  %v96_v44 = vand.u32 2147483648, %v83_v38  ;;  %vm86_vm2 = vcmp.eq.f32.partialorder %v82_v39, inf }
  0x92   :  { %129 = vrsqrt.f32 %v82_v39  ;;  %v89_v45 = vand.u32 2147483648, %v82_v39  ;;  %vm95_vm3 = vcmp.eq.f32.partialorder %v83_v38, 0.0  ;;  %vm88_vm4 = vcmp.eq.f32.partialorder %v82_v39, 0.0 }
  0x9b   :  { %v128_v40 = vpop.eup %127 }
  0x9c   :  { %v130_v41 = vpop.eup %129  ;;  %v92_v42 = vmul.f32 %v128_v40, %v83_v38 }
  0x9d   :  { %v85_v43 = vmul.f32 %v130_v41, %v82_v39 }
  0x9e   :  { %v94_v46 = vsel %vm93_vm0, %v83_v38, %v92_v42 }
  0x9f   :  { %v87_v47 = vsel %vm86_vm2, %v82_v39, %v85_v43  ;;  %v97_v48 = vsel %vm95_vm3, %v96_v44, %v94_v46 }
  0xa0   :  { %v90_v49 = vsel %vm88_vm4, %v89_v45, %v87_v47  ;;  %100 = vst.msk [vmem:[#allocation2 + $0x8] sm:$0xff] %vm98_vm1, %v97_v48 }
  0xa1   :  { %99 = vst.msk [vmem:[#allocation2] sm:$0xff] %vm98_vm1, %v90_v49 }
  0xa2   :  { %142 = shalt.err (!%p139_p4)
}
  0xa3   :  { %s143_s20 = scalar_lea.hbm %s202_s2, 256 }
  0xa4   :  { %p144_p5 = scmp.ne.s32.totalorder %s202_s2, %s143_s20  ;;  %p147_p6 = scmp.lt.u32.totalorder %s143_s20, %s202_s2 }
  0xa6   :  { %p149_p7 = pnand %p147_p6, %p144_p5 }
  0xa8   :  { %152 = shalt.err (!%p149_p7)
}
  0xa9   :  { %s159_s25 = smov 128   ;;  %s160_s26 = smov 8  }
  0xaa   :  { %112 = dma.vmem_to_hbm [thread:$0]  %s107_s1, 256, %s202_s2, [#allocation3], %s159_s25, %s159_s25, %s160_s26  }
  0xab   :  { %153 = dma.done.wait [#allocation3], 256  }
  0xac   :  { %154 = vsyncadd [#allocation3], 4294967040 }
  0xad   :  { %116 = vsyncpa [#allocation3], 1 }

</bundles_post_ra>
